<compile_context>
chip_gen: v6e
topology: v6e:2x2x1
jax: 0.10.0
libtpu: 0.0.40
codegen_flags: <defaults>
</compile_context>

<pallas_src>
import functools

import jax
import jax.numpy as jnp
from jax import lax
from jax.experimental import pallas as pl
from jax.experimental.pallas import tpu as pltpu

LANE = 128


def _pair(v):
    if v is None:
        return None
    if isinstance(v, (tuple, list)):
        return (int(v[0]), int(v[1]))
    return (int(v), int(v))


def _vmem_capacity_bytes():
    """Physical VMEM per TensorCore; conservative (v7x) fallback."""
    try:
        info = pltpu.get_tpu_info()
        v = getattr(info, "vmem_capacity_bytes", None)
        if v:
            return int(v)
    except Exception:
        pass
    return 64 * 1024 * 1024


# ----------------------------------------------------------------------------
# Pallas kernel: element-wise running max-by-|z|^2 select over window taps
# ----------------------------------------------------------------------------
def _complex_maxpool_kernel(x_ref, o_ref, *, taps):
    # x_ref : (2, T, TR, 128)   [0]=real taps, [1]=imag taps
    # o_ref : (2, TR, 128)
    best_r = x_ref[0, 0]
    best_i = x_ref[1, 0]
    best_a = best_r * best_r + best_i * best_i          # squared magnitude

    def _step(rt, it, best_a, best_r, best_i):
        at = rt * rt + it * it
        sel = at > best_a                                # strict ">" => first max wins
        return (jnp.where(sel, at, best_a),
                jnp.where(sel, rt, best_r),
                jnp.where(sel, it, best_i))

    if taps <= 16:
        # Small windows (2x2, 3x3, 4x4): full static unroll.
        for t in range(1, taps):
            best_a, best_r, best_i = _step(x_ref[0, t], x_ref[1, t],
                                           best_a, best_r, best_i)
    else:
        # Large windows: bounded code size / vreg live ranges.
        def body(t, carry):
            ba, br, bi = carry
            return _step(x_ref[0, t], x_ref[1, t], ba, br, bi)
        best_a, best_r, best_i = lax.fori_loop(
            1, taps, body, (best_a, best_r, best_i), unroll=2)

    o_ref[0] = best_r.astype(o_ref.dtype)
    o_ref[1] = best_i.astype(o_ref.dtype)


# ----------------------------------------------------------------------------
# Wrapper: tap extraction (fused where possible), lane-dense tiling, pallas_call
# ----------------------------------------------------------------------------
def complex_max_pool2d(input_r, input_i, kernel_size, stride=None, padding=0,
                       dilation=1, ceil_mode=False, return_indices=False):
    """input_r, input_i: (N, C, H, W) float32.  Returns (out_r, out_i) in NCHW."""
    KH, KW = _pair(kernel_size)
    sh, sw = _pair(stride) if stride is not None else (KH, KW)
    ph, pw = _pair(padding)
    dh, dw = _pair(dilation)
    assert not ceil_mode  # TODO(synk): ceil_mode output-size rounding not implemented
    # return_indices is ignored: the reference forward always returns (r, i).

    N, C, H, W = input_r.shape
    Hout = (H + 2 * ph - dh * (KH - 1) - 1) // sh + 1
    Wout = (W + 2 * pw - dw * (KW - 1) - 1) // sw + 1
    T = KH * KW
    M = N * C * Hout * Wout

    # ---- wrapper-side layout plumbing (XLA glue) --------------------------------
    x = jnp.stack([input_r, input_i], 0)                  # (2, N, C, H, W)

    non_overlap = (dh == 1 and dw == 1 and sh == KH and sw == KW and
                   ph == 0 and pw == 0 and H % KH == 0 and W % KW == 0)
    if non_overlap:
        # Single reshape + transpose: one XLA copy instead of T strided gathers.
        x6 = x.reshape(2, N, C, Hout, KH, Wout, KW)
        x_t = x6.transpose(0, 4, 6, 1, 2, 3, 5).reshape(2, T, M)
    else:
        # General case: zero-padding is safe because padded |z|^2 = 0 can only
        # tie with true zero-magnitude pixels, whose (r, i) output is 0 anyway.
        x_p = jnp.pad(x, ((0, 0), (0, 0), (0, 0), (ph, ph), (pw, pw)))
        taps = []
        for kh in range(KH):
            for kw in range(KW):
                h0, w0 = kh * dh, kw * dw
                sl = (slice(None), slice(None), slice(None),
                      slice(h0, h0 + (Hout - 1) * sh + 1, sh),
                      slice(w0, w0 + (Wout - 1) * sw + 1, sw))
                taps.append(x_p[sl].reshape(2, M))
        x_t = jnp.stack(taps, 1)                          # (2, T, M)

    # ---- lane-dense slab: (2, T, R_tot, 128); rows tiled by a 1-D grid ---------
    R = -(-M // LANE)                                     # 128-lane rows
    R_pad = -(-R // 8) * 8                                # sublane multiple of 8

    # Generation-aware tile budget: total double-buffered in+out footprint
    # stays under ~half of the scoped VMEM limit (itself ~half of physical).
    vmem_phys = _vmem_capacity_bytes()
    vmem_limit = min(64 * 1024 * 1024, vmem_phys // 2)    # 64 MiB v5e/v6e, 32 MiB v7x
    itemsize = jnp.dtype(input_r.dtype).itemsize
    per_row_db = 2 * 2 * (T + 1) * LANE * itemsize        # 2 buffers x (in + out) rows
    tr_budget = max(8, (vmem_limit // 2 // per_row_db) // 8 * 8)

    TR = min(tr_budget, R_pad)
    # Guarantee several grid steps (pipelining + v7x 2-TC sharding) when possible.
    target_steps = min(4, R_pad // 8)
    if target_steps > 1:
        TR = min(TR, max(8, (R_pad // target_steps) // 8 * 8))
    R_tot = -(-R_pad // TR) * TR
    M_tot = R_tot * LANE

    if M_tot != M:
        x_t = jnp.pad(x_t, ((0, 0), (0, 0), (0, M_tot - M)))
    x_t = x_t.reshape(2, T, R_tot, LANE)

    kernel = functools.partial(_complex_maxpool_kernel, taps=T)
    in_spec = pl.BlockSpec((2, T, TR, LANE), lambda g: (0, 0, g, 0))
    out_spec = pl.BlockSpec((2, TR, LANE), lambda g: (0, g, 0))

    out = pl.pallas_call(
        kernel,
        out_shape=jax.ShapeDtypeStruct((2, R_tot, LANE), input_r.dtype),
        grid=(R_tot // TR,),
        in_specs=[in_spec],
        out_specs=out_spec,
        compiler_params=pltpu.CompilerParams(
            dimension_semantics=("parallel",),
            allow_input_fusion=[True],                    # fuse tap staging into the DMA
            vmem_limit_bytes=vmem_limit),
        cost_estimate=pl.CostEstimate(
            flops=7 * T * M_tot,
            transcendentals=0,
            bytes_accessed=(2 * T * M_tot + 2 * M_tot) * itemsize),
    )(x_t)

    if M_tot == M:
        out_r = out[0].reshape(N, C, Hout, Wout)
        out_i = out[1].reshape(N, C, Hout, Wout)
    else:
        out_r = out[0].reshape(-1)[:M].reshape(N, C, Hout, Wout)
        out_i = out[1].reshape(-1)[:M].reshape(N, C, Hout, Wout)
    return out_r, out_i


# ----------------------------------------------------------------------------
# Pure-JAX reference (mirrors the PyTorch semantics) for verification
# ----------------------------------------------------------------------------
def complex_max_pool2d_ref(input_r, input_i, kernel_size, stride=None,
                           padding=0, dilation=1):
    KH, KW = _pair(kernel_size)
    sh, sw = _pair(stride) if stride is not None else (KH, KW)
    ph, pw = _pair(padding)
    dh, dw = _pair(dilation)
    N, C, H, W = input_r.shape
    Hout = (H + 2 * ph - dh * (KH - 1) - 1) // sh + 1
    Wout = (W + 2 * pw - dw * (KW - 1) - 1) // sw + 1

    absval = jnp.sqrt(input_r ** 2 + input_i ** 2)
    pad = ((0, 0), (0, 0), (ph, ph), (pw, pw))
    a_p = jnp.pad(absval, pad, constant_values=-jnp.inf)
    r_p = jnp.pad(input_r, pad)
    i_p = jnp.pad(input_i, pad)

    A, Rt, It = [], [], []
    for kh in range(KH):
        for kw in range(KW):
            h0, w0 = kh * dh, kw * dw
            sl = (slice(None), slice(None),
                  slice(h0, h0 + (Hout - 1) * sh + 1, sh),
                  slice(w0, w0 + (Wout - 1) * sw + 1, sw))
            A.append(a_p[sl]); Rt.append(r_p[sl]); It.append(i_p[sl])
    A = jnp.stack(A, -1)
    Rt = jnp.stack(Rt, -1)
    It = jnp.stack(It, -1)
    idx = jnp.argmax(A, -1)             # first occurrence on ties (torch tie-break)
    out_r = jnp.take_along_axis(Rt, idx[..., None], -1)[..., 0]
    out_i = jnp.take_along_axis(It, idx[..., None], -1)[..., 0]
    return out_r, out_i


if __name__ == "__main__":
    key = jax.random.PRNGKey(0)
    k_r, k_i = jax.random.split(key)
    N, C, H, W = 2, 4, 16, 16
    xr = jax.random.normal(k_r, (N, C, H, W), jnp.float32)
    xi = jax.random.normal(k_i, (N, C, H, W), jnp.float32)

    # Case 1: kernel_size=2, stride defaults to kernel_size, no padding
    #          (fast non-overlapping reshape/transpose staging path).
    out_r, out_i = complex_max_pool2d(xr, xi, kernel_size=2)
    jax.block_until_ready((out_r, out_i))
    ref_r, ref_i = complex_max_pool2d_ref(xr, xi, kernel_size=2)
    assert out_r.shape == ref_r.shape == (N, C, 8, 8)
    assert float(jnp.max(jnp.abs(out_r - ref_r))) < 1e-6
    assert float(jnp.max(jnp.abs(out_i - ref_i))) < 1e-6

    # Case 2: overlapping windows with padding and explicit stride
    #          (general strided-slice staging path).
    out_r2, out_i2 = complex_max_pool2d(xr, xi, kernel_size=3, stride=2, padding=1)
    jax.block_until_ready((out_r2, out_i2))
    ref_r2, ref_i2 = complex_max_pool2d_ref(xr, xi, kernel_size=3, stride=2, padding=1)
    assert out_r2.shape == ref_r2.shape == (N, C, 8, 8)
    assert float(jnp.max(jnp.abs(out_r2 - ref_r2))) < 1e-6
    assert float(jnp.max(jnp.abs(out_i2 - ref_i2))) < 1e-6

    print("KERNEL_OK")
</pallas_src>

<mosaic_0001>
module attributes {stable_mosaic.version = 11 : i64} {
  func.func @_complex_maxpool_kernel(%arg0: i32, %arg1: memref<2x4x8x128xf32, #tpu.memory_space<vmem>>, %arg2: memref<2x8x128xf32, #tpu.memory_space<vmem>>) attributes {dimension_semantics = [#tpu.dimension_semantics<parallel>], iteration_bounds = array<i64: 1>, scalar_prefetch = 0 : i64, scratch_operands = 0 : i64, tpu.core_type = #tpu.core_type<tc>, window_params = [{transform_indices = @transform_0, window_bounds = array<i64: 2, 4, 8, 128>}, {transform_indices = @transform_1, window_bounds = array<i64: 2, 8, 128>}]} {
    %c0 = arith.constant 0 : index
    %c0_0 = arith.constant 0 : index
    %c0_1 = arith.constant 0 : index
    %c0_2 = arith.constant 0 : index
    %0 = vector.load %arg1[%c0, %c0_0, %c0_1, %c0_2] : memref<2x4x8x128xf32, #tpu.memory_space<vmem>>, vector<1x1x8x128xf32>
    %1 = vector.shape_cast %0 : vector<1x1x8x128xf32> to vector<8x128xf32>
    %c1 = arith.constant 1 : index
    %c0_3 = arith.constant 0 : index
    %c0_4 = arith.constant 0 : index
    %c0_5 = arith.constant 0 : index
    %2 = vector.load %arg1[%c1, %c0_3, %c0_4, %c0_5] : memref<2x4x8x128xf32, #tpu.memory_space<vmem>>, vector<1x1x8x128xf32>
    %3 = vector.shape_cast %2 : vector<1x1x8x128xf32> to vector<8x128xf32>
    %4 = arith.mulf %1, %1 : vector<8x128xf32>
    %5 = arith.mulf %3, %3 : vector<8x128xf32>
    %6 = arith.addf %4, %5 : vector<8x128xf32>
    %c0_6 = arith.constant 0 : index
    %c1_7 = arith.constant 1 : index
    %c0_8 = arith.constant 0 : index
    %c0_9 = arith.constant 0 : index
    %7 = vector.load %arg1[%c0_6, %c1_7, %c0_8, %c0_9] : memref<2x4x8x128xf32, #tpu.memory_space<vmem>>, vector<1x1x8x128xf32>
    %8 = vector.shape_cast %7 : vector<1x1x8x128xf32> to vector<8x128xf32>
    %c1_10 = arith.constant 1 : index
    %c1_11 = arith.constant 1 : index
    %c0_12 = arith.constant 0 : index
    %c0_13 = arith.constant 0 : index
    %9 = vector.load %arg1[%c1_10, %c1_11, %c0_12, %c0_13] : memref<2x4x8x128xf32, #tpu.memory_space<vmem>>, vector<1x1x8x128xf32>
    %10 = vector.shape_cast %9 : vector<1x1x8x128xf32> to vector<8x128xf32>
    %11 = arith.mulf %8, %8 : vector<8x128xf32>
    %12 = arith.mulf %10, %10 : vector<8x128xf32>
    %13 = arith.addf %11, %12 : vector<8x128xf32>
    %14 = arith.cmpf ogt, %13, %6 : vector<8x128xf32>
    %15 = arith.select %14, %13, %6 : vector<8x128xi1>, vector<8x128xf32>
    %16 = arith.select %14, %8, %1 : vector<8x128xi1>, vector<8x128xf32>
    %17 = arith.select %14, %10, %3 : vector<8x128xi1>, vector<8x128xf32>
    %c0_14 = arith.constant 0 : index
    %c2 = arith.constant 2 : index
    %c0_15 = arith.constant 0 : index
    %c0_16 = arith.constant 0 : index
    %18 = vector.load %arg1[%c0_14, %c2, %c0_15, %c0_16] : memref<2x4x8x128xf32, #tpu.memory_space<vmem>>, vector<1x1x8x128xf32>
    %19 = vector.shape_cast %18 : vector<1x1x8x128xf32> to vector<8x128xf32>
    %c1_17 = arith.constant 1 : index
    %c2_18 = arith.constant 2 : index
    %c0_19 = arith.constant 0 : index
    %c0_20 = arith.constant 0 : index
    %20 = vector.load %arg1[%c1_17, %c2_18, %c0_19, %c0_20] : memref<2x4x8x128xf32, #tpu.memory_space<vmem>>, vector<1x1x8x128xf32>
    %21 = vector.shape_cast %20 : vector<1x1x8x128xf32> to vector<8x128xf32>
    %22 = arith.mulf %19, %19 : vector<8x128xf32>
    %23 = arith.mulf %21, %21 : vector<8x128xf32>
    %24 = arith.addf %22, %23 : vector<8x128xf32>
    %25 = arith.cmpf ogt, %24, %15 : vector<8x128xf32>
    %26 = arith.select %25, %24, %15 : vector<8x128xi1>, vector<8x128xf32>
    %27 = arith.select %25, %19, %16 : vector<8x128xi1>, vector<8x128xf32>
    %28 = arith.select %25, %21, %17 : vector<8x128xi1>, vector<8x128xf32>
    %c0_21 = arith.constant 0 : index
    %c3 = arith.constant 3 : index
    %c0_22 = arith.constant 0 : index
    %c0_23 = arith.constant 0 : index
    %29 = vector.load %arg1[%c0_21, %c3, %c0_22, %c0_23] : memref<2x4x8x128xf32, #tpu.memory_space<vmem>>, vector<1x1x8x128xf32>
    %30 = vector.shape_cast %29 : vector<1x1x8x128xf32> to vector<8x128xf32>
    %c1_24 = arith.constant 1 : index
    %c3_25 = arith.constant 3 : index
    %c0_26 = arith.constant 0 : index
    %c0_27 = arith.constant 0 : index
    %31 = vector.load %arg1[%c1_24, %c3_25, %c0_26, %c0_27] : memref<2x4x8x128xf32, #tpu.memory_space<vmem>>, vector<1x1x8x128xf32>
    %32 = vector.shape_cast %31 : vector<1x1x8x128xf32> to vector<8x128xf32>
    %33 = arith.mulf %30, %30 : vector<8x128xf32>
    %34 = arith.mulf %32, %32 : vector<8x128xf32>
    %35 = arith.addf %33, %34 : vector<8x128xf32>
    %36 = arith.cmpf ogt, %35, %26 : vector<8x128xf32>
    %37 = arith.select %36, %30, %27 : vector<8x128xi1>, vector<8x128xf32>
    %38 = arith.select %36, %32, %28 : vector<8x128xi1>, vector<8x128xf32>
    %c0_28 = arith.constant 0 : index
    %c0_29 = arith.constant 0 : index
    %c0_30 = arith.constant 0 : index
    %39 = vector.load %arg2[%c0_28, %c0_29, %c0_30] : memref<2x8x128xf32, #tpu.memory_space<vmem>>, vector<1x8x128xf32>
    %40 = vector.shape_cast %39 : vector<1x8x128xf32> to vector<8x128xf32>
    %41 = vector.shape_cast %37 : vector<8x128xf32> to vector<1x8x128xf32>
    tpu.vector_store %arg2[%c0_28, %c0_29, %c0_30], %41 {strides = array<i32>} : memref<2x8x128xf32, #tpu.memory_space<vmem>>, vector<1x8x128xf32>,
    %c1_31 = arith.constant 1 : index
    %c0_32 = arith.constant 0 : index
    %c0_33 = arith.constant 0 : index
    %42 = vector.load %arg2[%c1_31, %c0_32, %c0_33] : memref<2x8x128xf32, #tpu.memory_space<vmem>>, vector<1x8x128xf32>
    %43 = vector.shape_cast %42 : vector<1x8x128xf32> to vector<8x128xf32>
    %44 = vector.shape_cast %38 : vector<8x128xf32> to vector<1x8x128xf32>
    tpu.vector_store %arg2[%c1_31, %c0_32, %c0_33], %44 {strides = array<i32>} : memref<2x8x128xf32, #tpu.memory_space<vmem>>, vector<1x8x128xf32>,
    return
  }
  func.func @transform_0(%arg0: i32) -> (i32, i32, i32, i32) {
    %c0_i32 = arith.constant 0 : i32
    %c0_i32_0 = arith.constant 0 : i32
    %c0_i32_1 = arith.constant 0 : i32
    %c0_i32_2 = arith.constant 0 : i32
    return %c0_i32, %c0_i32_0, %arg0, %c0_i32_1 : i32, i32, i32, i32
  }
  func.func @transform_1(%arg0: i32) -> (i32, i32, i32) {
    %c0_i32 = arith.constant 0 : i32
    %c0_i32_0 = arith.constant 0 : i32
    %c0_i32_1 = arith.constant 0 : i32
    return %c0_i32, %arg0, %c0_i32_0 : i32, i32, i32
  }
}

</mosaic_0001>

<bundles_post_ra>
// kernel: tpu_custom_call.1
= control target key start
LH: loop header
LB: loop body
LE: loop exit
PB: predicated region body
PF: predicated region fallthrough
CT: control target
= control target key end

     0   :  { %6 = vsyncpa [#allocation3], 0  ;;  %s155_s0 = inlined_call_operand.hbm [shape: f32[2,4,8,128], index: 0, kind: input, shape index: {}]   ;;  %s156_s1 = inlined_call_operand.hbm [shape: f32[2,8,128], index: 1, kind: output, shape index: {}]  }
   0x1   :  { %7 = vsyncpa [#allocation4], 0  ;;  %s129_s6 = smov [#allocation2]  }
   0x2   :  { %s13_s7 = sshll.u32 %s129_s6, 4  ;;  %s14_s7 = int_to_ptr.vmem [resolvable:$true] %s13_s7 }
   0x3   :  { %s93_s8 = scalar_lea.vmem %s14_s7, 1024  ;;  %p98_p1 = scmp.lt.s32.totalorder %s14_s7, %s14_s7 }
   0x4   :  { %p94_p0 = scmp.ne.s32.totalorder %s14_s7, %s93_s8  ;;  %p99_p2 = scmp.lt.s32.totalorder %s93_s8, %s93_s8 }
   0x6   :  { %p100_p3 = por %p99_p2, %p98_p1 }
   0x8   :  { %p101_p4 = pnand %p100_p3, %p94_p0 }
   0xa   :  { %104 = shalt.err (!%p101_p4)
}
   0xb   :  { %s130_s9 = smov 128   ;;  %s131_s10 = smov 8  }
   0xc   :  { %19 = dma.hbm_to_vmem [thread:$0]  %s155_s0, 1024, %s14_s7, [#allocation3], %s130_s9, %s130_s9, %s131_s10  }
   0xd   :  { %125 = dma.done.wait [#allocation3], 1024  }
   0xe   :  { %126 = vsyncadd [#allocation3], 4294966272  ;;  %v23_v0 = vld [vmem:[#allocation2] sm:$0xff]  ;;  %v30_v2 = vld [vmem:[#allocation2 + $0x8] sm:$0xff]  ;;  %s132_s0 = smov [#allocation5]  }
   0xf   :  { %v25_v1 = vld [vmem:[#allocation2 + $0x20] sm:$0xff]  ;;  %v26_v3 = vmul.f32 %v23_v0, %v23_v0  ;;  %v32_v5 = vld [vmem:[#allocation2 + $0x28] sm:$0xff]  ;;  %v33_v6 = vmul.f32 %v30_v2, %v30_v2  ;;  %v41_v7 = vld [vmem:[#allocation2 + $0x10] sm:$0xff]  ;;  %s69_s13 = sshll.u32 %s132_s0, 4  ;;  %s70_s13 = int_to_ptr.vmem [resolvable:$true] %s69_s13 }
  0x10   :  { %v27_v4 = vmul.f32 %v25_v1, %v25_v1  ;;  %v43_v8 = vld [vmem:[#allocation2 + $0x30] sm:$0xff]  ;;  %v34_v9 = vmul.f32 %v32_v5, %v32_v5  ;;  %v44_v10 = vmul.f32 %v41_v7, %v41_v7  ;;  %v52_v12 = vld [vmem:[#allocation2 + $0x18] sm:$0xff]  ;;  %s105_s14 = scalar_lea.vmem %s70_s13, 256  ;;  %p110_p6 = scmp.lt.s32.totalorder %s70_s13, %s70_s13 }
  0x11   :  { %v45_v11 = vmul.f32 %v43_v8, %v43_v8  ;;  %v54_v13 = vld [vmem:[#allocation2 + $0x38] sm:$0xff]  ;;  %v55_v15 = vmul.f32 %v52_v12, %v52_v12  ;;  %p106_p5 = scmp.ne.s32.totalorder %s70_s13, %s105_s14  ;;  %p111_p7 = scmp.lt.s32.totalorder %s105_s14, %s105_s14 }
  0x12   :  { %v28_v14 = vadd.f32 %v27_v4, %v26_v3  ;;  %v56_v16 = vmul.f32 %v54_v13, %v54_v13  ;;  %v35_v17 = vadd.f32 %v34_v9, %v33_v6 }
  0x13   :  { %v46_v18 = vadd.f32 %v45_v11, %v44_v10  ;;  %p112_p8 = por %p111_p7, %p110_p6 }
  0x14   :  { %vm36_vm0 = vcmp.gt.f32.partialorder %v35_v17, %v28_v14  ;;  %v57_v19 = vadd.f32 %v56_v16, %v55_v15 }
  0x15   :  { %v37_v20 = vsel %vm36_vm0, %v35_v17, %v28_v14  ;;  %v38_v21 = vsel %vm36_vm0, %v30_v2, %v23_v0  ;;  %v39_v22 = vsel %vm36_vm0, %v32_v5, %v25_v1  ;;  %p113_p9 = pnand %p112_p8, %p106_p5 }
  0x16   :  { %vm47_vm1 = vcmp.gt.f32.partialorder %v46_v18, %v37_v20 }
  0x17   :  { %v48_v23 = vsel %vm47_vm1, %v46_v18, %v37_v20  ;;  %v49_v24 = vsel %vm47_vm1, %v41_v7, %v38_v21  ;;  %v50_v25 = vsel %vm47_vm1, %v43_v8, %v39_v22 }
  0x18   :  { %vm58_vm2 = vcmp.gt.f32.partialorder %v57_v19, %v48_v23 }
  0x19   :  { %v59_v26 = vsel %vm58_vm2, %v52_v12, %v49_v24  ;;  %v60_v27 = vsel %vm58_vm2, %v54_v13, %v50_v25 }
  0x1a   :  { %61 = vst [vmem:[#allocation5] sm:$0xff] %v59_v26  ;;  %63 = vst [vmem:[#allocation5 + $0x8] sm:$0xff] %v60_v27 }
  0x1b   :  { %116 = shalt.err (!%p113_p9)
}
  0x1c   :  { %75 = dma.vmem_to_hbm [thread:$0]  %s70_s13, 256, %s156_s1, [#allocation4], %s130_s9, %s130_s9, %s131_s10  }
  0x1d   :  { %127 = dma.done.wait [#allocation4], 256  }
  0x1e   :  { %128 = vsyncadd [#allocation4], 4294967040 }
  0x1f   :  { %79 = vsyncpa [#allocation3], 1 }
  0x20   :  { %80 = vsyncpa [#allocation4], 1 }

</bundles_post_ra>
